<compile_context>
chip_gen: v7x
topology: tpu7x:2x2x1
jax: 0.10.0
libtpu: 0.0.40
codegen_flags: <defaults>
</compile_context>

<pallas_src>
import functools
import math

import jax
import jax.numpy as jnp
import numpy as np
from jax.experimental import pallas as pl
from jax.experimental.pallas import tpu as pltpu


def _encoder_kernel(x_ref, w_ref, b_ref, out_ref):
    # One MXU matmul + VPU bias add per (tile_rows, 128) lane-dense output tile.
    out_ref[...] = (
        jnp.dot(x_ref[...], w_ref[...], preferred_element_type=jnp.float32)
        + b_ref[...]
    ).astype(out_ref.dtype)


def _round_up(x, m):
    return -(-x // m) * m


@functools.partial(
    jax.jit, static_argnames=("tile_packed_rows", "core_parallel", "out_dtype")
)
def _patch_encoder_jit(feature, coordinates, params, *, tile_packed_rows=4096,
                       core_parallel=False, out_dtype=jnp.float32):
    """Returns jnp.stack(x_list): shape (N, B, channel[2])."""
    w1, b1, w2, b2, w3, b3, we, be = params
    B = feature.shape[0]
    c0 = feature.shape[2]
    n_nodes = coordinates.shape[0]
    c2 = we.shape[1]

    # ---- trace-time constant folding (weights only, no activation traffic) -------
    # continuous_kernel is only read at the centre node's relative coordinate, which
    # is always the zero vector -> k0 = MLP(0) depends only on the weights.
    h = jnp.maximum(b1, 0.0)
    h = jnp.maximum(h @ w2 + b2, 0.0)
    k0 = h @ w3 + b3                                         # (c1,)
    wf = we[:c0, :]                                          # acts on the raw feature
    wk = we[c0:, :]                                          # acts on k0
    bias_fused = k0 @ wk + be                                # (c2,) fused into the bias

    # ---- lane-dense packing: F rows of width c2 -> one row of width F*c2 (mult of 128)
    F = 128 // math.gcd(c2, 128)
    c2p = F * c2
    w_big = jnp.kron(jnp.eye(F, dtype=jnp.float32), wf.astype(jnp.float32))  # (F*c0, F*c2)
    bias_big = jnp.tile(bias_fused.astype(jnp.float32), F).reshape(1, c2p)   # (1, F*c2)

    # ---- row layout: r = node*B + batch  (matches torch.stack(x_list) ordering) ----
    R = n_nodes * B
    RP = -(-R // F)                                          # packed rows needed
    RP8 = _round_up(RP, 8)                                   # sublane-aligned row count
    n_tiles = max(1, -(-RP8 // tile_packed_rows))            # grid size
    tmp = _round_up(-(-RP8 // n_tiles), 8)                   # even tiles, <8 rows waste
    RP_pad = n_tiles * tmp
    R_pad = RP_pad * F

    # Input is only 12 B/row; transpose+pad+reshape fuse into one copy under jit.
    x2d = jnp.transpose(feature[:, :n_nodes, :], (1, 0, 2)).reshape(R, c0)
    x2d = x2d.astype(jnp.float32)
    if R_pad > R:
        x2d = jnp.pad(x2d, ((0, R_pad - R), (0, 0)))
    xr = x2d.reshape(RP_pad, F * c0)                         # free row-major reshape

    dim_sem = (
        (pltpu.CORE_PARALLEL,) if (core_parallel and n_tiles >= 2) else ("parallel",)
    )

    out_bytes = RP_pad * c2p * jnp.dtype(out_dtype).itemsize
    cost = pl.CostEstimate(
        flops=2 * RP_pad * (F * c0) * c2p,
        transcendentals=0,
        bytes_accessed=(xr.size + w_big.size + bias_big.size) * 4 + out_bytes,
    )

    out_packed = pl.pallas_call(
        _encoder_kernel,
        grid=(n_tiles,),
        in_specs=[
            pl.BlockSpec((tmp, F * c0), lambda i: (i, 0)),   # row tile (auto-pipelined)
            pl.BlockSpec((F * c0, c2p), lambda i: (0, 0)),   # block-diag weight, resident
            pl.BlockSpec((1, c2p), lambda i: (0, 0)),        # fused bias, resident
        ],
        out_specs=pl.BlockSpec((tmp, c2p), lambda i: (i, 0)),
        out_shape=jax.ShapeDtypeStruct((RP_pad, c2p), out_dtype),
        compiler_params=pltpu.CompilerParams(
            dimension_semantics=dim_sem,
            vmem_limit_bytes=16 * 1024 * 1024,               # ~8 MiB used at tmp=4096
        ),
        cost_estimate=cost,
    )(xr, w_big, bias_big)

    out2d = out_packed.reshape(R_pad, c2)[:R]                # free unpack + drop padding
    return out2d.reshape(n_nodes, B, c2)


def _prefer_core_parallel():
    # Only v7x has 2 TensorCores per chip; "parallel" alone does not split them.
    try:
        kind = jax.devices()[0].device_kind.lower()
    except Exception:
        return False
    return "v7" in kind


def patch_encoder_forward(feature, coordinates, params, *, tile_packed_rows=4096,
                          out_dtype=jnp.float32):
    """Public entry: gates CORE_PARALLEL per-generation with a safe fallback."""
    if _prefer_core_parallel():
        try:
            out = _patch_encoder_jit(
                feature, coordinates, params,
                tile_packed_rows=tile_packed_rows,
                core_parallel=True, out_dtype=out_dtype)
            return jax.block_until_ready(out)
        except Exception:
            pass  # fall back to single-core semantics below
    return _patch_encoder_jit(
        feature, coordinates, params,
        tile_packed_rows=tile_packed_rows,
        core_parallel=False, out_dtype=out_dtype)


def init_params(key, channel=(3, 8, 16)):
    """Deterministic params: Linear weights stored (in, out); y = x @ W + b."""
    c0, c1, c2 = channel
    dims = [(2, 8), (8, 16), (16, c1), (c0 + c1, c2)]
    keys = jax.random.split(key, 2 * len(dims))
    params = []
    for i, (fin, fout) in enumerate(dims):
        bound = 1.0 / np.sqrt(fin)
        w = jax.random.uniform(keys[2 * i], (fin, fout), jnp.float32, -bound, bound)
        b = jax.random.uniform(keys[2 * i + 1], (fout,), jnp.float32, -bound, bound)
        params += [w, b]
    return tuple(params)


def reference_forward(feature, coordinates, params):
    """Literal plain-JAX transliteration of the PyTorch forward (builds x_list)."""
    w1, b1, w2, b2, w3, b3, we, be = params

    def mlp(x):
        x = jnp.maximum(x @ w1 + b1, 0.0)
        x = jnp.maximum(x @ w2 + b2, 0.0)
        return x @ w3 + b3

    B = feature.shape[0]
    outs = []
    for i in range(coordinates.shape[0]):
        r = coordinates - coordinates[i]
        k = mlp(r)                                           # (N, c1)
        rows = [jnp.concatenate([feature[b, i, :], k[i, :]]) for b in range(B)]
        x = jnp.stack(rows)                                  # (B, c0+c1)
        outs.append(x @ we + be)                             # (B, c2)
    return jnp.stack(outs)                                   # (N, B, c2)


def reference_forward_vmapped(feature, coordinates, params):
    """Vectorized (per-node vmap) reference for larger shapes."""
    w1, b1, w2, b2, w3, b3, we, be = params

    def mlp(x):
        x = jnp.maximum(x @ w1 + b1, 0.0)
        x = jnp.maximum(x @ w2 + b2, 0.0)
        return x @ w3 + b3

    B = feature.shape[0]

    def per_node(i):
        r = coordinates - coordinates[i]
        k = mlp(r)                                           # (N, c1)
        krow = jnp.broadcast_to(k[i], (B, k.shape[1]))       # (B, c1)
        x = jnp.concatenate([feature[:, i, :], krow], axis=1)
        return x @ we + be                                   # (B, c2)

    return jax.vmap(per_node)(jnp.arange(coordinates.shape[0]))


if __name__ == "__main__":
    key = jax.random.PRNGKey(0)
    k_feat, k_coord, k_param, k_feat2, k_coord2 = jax.random.split(key, 5)

    channel = (3, 8, 16)
    params = init_params(k_param, channel)

    # ---- small shape: check against the literal per-node loop reference ---------
    B, N = 2, 8
    feature = jax.random.normal(k_feat, (B, N, channel[0]), jnp.float32)
    coordinates = jax.random.normal(k_coord, (N, 2), jnp.float32)

    out = jax.block_until_ready(patch_encoder_forward(feature, coordinates, params))
    ref = reference_forward(feature, coordinates, params)
    np.testing.assert_allclose(np.asarray(out), np.asarray(ref), rtol=1e-4, atol=1e-4)

    # ---- larger shape: exercises minimal row padding + larger single tile -------
    B2, N2 = 4, 300
    feature2 = jax.random.normal(k_feat2, (B2, N2, channel[0]), jnp.float32)
    coordinates2 = jax.random.normal(k_coord2, (N2, 2), jnp.float32)

    out2 = jax.block_until_ready(patch_encoder_forward(feature2, coordinates2, params))
    ref2 = reference_forward_vmapped(feature2, coordinates2, params)
    np.testing.assert_allclose(np.asarray(out2), np.asarray(ref2), rtol=1e-4, atol=1e-4)

    print("KERNEL_OK")
</pallas_src>

<mosaic_0001>
module attributes {stable_mosaic.version = 11 : i64} {
  func.func @_encoder_kernel(%arg0: i32, %arg1: memref<8x24xf32, #tpu.memory_space<vmem>>, %arg2: memref<24x128xf32, #tpu.memory_space<vmem>>, %arg3: memref<1x128xf32, #tpu.memory_space<vmem>>, %arg4: memref<8x128xf32, #tpu.memory_space<vmem>>) attributes {dimension_semantics = [#tpu.dimension_semantics<parallel>], iteration_bounds = array<i64: 1>, scalar_prefetch = 0 : i64, scratch_operands = 0 : i64, tpu.core_type = #tpu.core_type<tc>, window_params = [{transform_indices = @transform_0, window_bounds = array<i64: 8, 24>}, {pipeline_mode = #tpu.pipeline_mode<synchronous>, transform_indices = @transform_1, window_bounds = array<i64: 24, 128>}, {pipeline_mode = #tpu.pipeline_mode<synchronous>, transform_indices = @transform_2, window_bounds = array<i64: 1, 128>}, {transform_indices = @transform_3, window_bounds = array<i64: 8, 128>}]} {
    %c0 = arith.constant 0 : index
    %c0_0 = arith.constant 0 : index
    %0 = vector.load %arg1[%c0, %c0_0] : memref<8x24xf32, #tpu.memory_space<vmem>>, vector<8x24xf32>
    %c0_1 = arith.constant 0 : index
    %c0_2 = arith.constant 0 : index
    %1 = vector.load %arg2[%c0_1, %c0_2] : memref<24x128xf32, #tpu.memory_space<vmem>>, vector<24x128xf32>
    %cst = arith.constant dense<0.000000e+00> : vector<8x128xf32>
    %2 = tpu.matmul %0, %1, %cst {dimension_numbers = #tpu.dot_dimension_numbers<[1], [0], [0], [1], [0, 0, 1, 1], [], []>} : vector<8x24xf32>, vector<24x128xf32>, vector<8x128xf32> -> vector<8x128xf32>
    %c0_3 = arith.constant 0 : index
    %c0_4 = arith.constant 0 : index
    %3 = vector.load %arg3[%c0_3, %c0_4] : memref<1x128xf32, #tpu.memory_space<vmem>>, vector<1x128xf32>
    %4 = vector.broadcast %3 : vector<1x128xf32> to vector<8x128xf32>
    %5 = arith.addf %2, %4 : vector<8x128xf32>
    %c0_5 = arith.constant 0 : index
    %c0_6 = arith.constant 0 : index
    %6 = vector.load %arg4[%c0_5, %c0_6] : memref<8x128xf32, #tpu.memory_space<vmem>>, vector<8x128xf32>
    tpu.vector_store %arg4[%c0_5, %c0_6], %5 {strides = array<i32>} : memref<8x128xf32, #tpu.memory_space<vmem>>, vector<8x128xf32>,
    return
  }
  func.func @transform_0(%arg0: i32) -> (i32, i32) {
    %c0_i32 = arith.constant 0 : i32
    %c0_i32_0 = arith.constant 0 : i32
    return %arg0, %c0_i32 : i32, i32
  }
  func.func @transform_1(%arg0: i32) -> (i32, i32) {
    %c0_i32 = arith.constant 0 : i32
    %c0_i32_0 = arith.constant 0 : i32
    %c0_i32_1 = arith.constant 0 : i32
    return %c0_i32, %c0_i32_0 : i32, i32
  }
  func.func @transform_2(%arg0: i32) -> (i32, i32) {
    %c0_i32 = arith.constant 0 : i32
    %c0_i32_0 = arith.constant 0 : i32
    %c0_i32_1 = arith.constant 0 : i32
    return %c0_i32, %c0_i32_0 : i32, i32
  }
  func.func @transform_3(%arg0: i32) -> (i32, i32) {
    %c0_i32 = arith.constant 0 : i32
    %c0_i32_0 = arith.constant 0 : i32
    return %arg0, %c0_i32 : i32, i32
  }
}

</mosaic_0001>

<bundles_post_ra>
// kernel: tile.8
= control target key start
LH: loop header
LB: loop body
LE: loop exit
PB: predicated region body
PF: predicated region fallthrough
CT: control target
= control target key end

     0   :  { %s22_s0 = inlined_call_operand.vmem [shape: f32[16], index: 0, kind: input, shape index: {}]   ;;  %s23_s1 = inlined_call_operand.vmem [shape: f32[8,16], index: 1, kind: output, shape index: {}]  }
   0x1   :  { %v4_v0 = vld [vmem:[%s22_s0] ss:$0 sm:$0xff] }
   0x2   :  { %5 = vst [vmem:[%s23_s1] sm:$0xff] %v4_v0 }

// kernel: tile.9
= control target key start
LH: loop header
LB: loop body
LE: loop exit
PB: predicated region body
PF: predicated region fallthrough
CT: control target
= control target key end

     0   :  { %s67_s10 = smov 112   ;;  %s68_s11 = smov 80   ;;  %vm3_vm0 = vcmask 130048   ;;  %vm9_vm1 = vcmask 1048448   ;;  %vm15_vm2 = vcmask 917248   ;;  %vm21_vm3 = vcmask 786048   ;;  %s111_s0 = inlined_call_operand.vmem [shape: f32[8,16], index: 0, kind: input, shape index: {}]   ;;  %s112_s1 = inlined_call_operand.vmem [shape: f32[1,128], index: 1, kind: output, shape index: {}]  }
   0x1   :  { %v53_v0 = vld [vmem:[%s111_s0 + $0x7] sm:$0x1]   ;;  %v55_v1 = vld [vmem:[%s111_s0 + $0x5] sm:$0x1]   ;;  %v54_v2 = vld [vmem:[%s111_s0 + $0x6] sm:$0x1]  }
   0x2   :  { %7 = vrot.lane.b32.xlu0 %v53_v0, %s67_s10  ;;  %19 = vrot.lane.b32.xlu1 %v55_v1, %s68_s11  ;;  %v56_v3 = vld [vmem:[%s111_s0 + $0x4] sm:$0x1]   ;;  %v2_v4 = vld [vmem:[%s111_s0] sm:$0x1]   ;;  %s69_s18 = smov 96   ;;  %s70_s19 = smov 64  }
   0x3   :  { %4 = vst.msk [vmem:[#allocation0] sm:$0x1] %vm3_vm0, %v2_v4   ;;  %v57_v5 = vld [vmem:[%s111_s0 + $0x3] sm:$0x1]   ;;  %v58_v6 = vld [vmem:[%s111_s0 + $0x2] sm:$0x1]  }
   0x4   :  { %s71_s24 = smov 48   ;;  %s72_s25 = smov 32   ;;  %v59_v7 = vld [vmem:[%s111_s0 + $0x1] sm:$0x1]   ;;  %vm27_vm4 = vcmask 654848   ;;  %vm33_vm5 = vcmask 523648  }
   0x5   :  { %s73_s0 = smov 16   ;;  %vm39_vm6 = vcmask 392448   ;;  %vm45_vm7 = vcmask 261248  }
   0x6   :  { %13 = vrot.lane.b32.xlu0 %v54_v2, %s69_s18  ;;  %25 = vrot.lane.b32.xlu1 %v56_v3, %s70_s19 }
   0xa   :  { %31 = vrot.lane.b32.xlu0 %v57_v5, %s71_s24  ;;  %37 = vrot.lane.b32.xlu1 %v58_v6, %s72_s25 }
   0xe   :  { %43 = vrot.lane.b32.xlu0 %v59_v7, %s73_s0 }
  0x74   :  { %v8_v8 = vpop.permute.xlu0 %7   ;;  %v20_v9 = vpop.permute.xlu1 %19  }
  0x75   :  { %10 = vst.msk [vmem:[#allocation0] sm:$0x1] %vm9_vm1, %v8_v8  }
  0x78   :  { %v14_v10 = vpop.permute.xlu0 %13   ;;  %v26_v11 = vpop.permute.xlu1 %25  }
  0x79   :  { %16 = vst.msk [vmem:[#allocation0] sm:$0x1] %vm15_vm2, %v14_v10  }
  0x7a   :  { %22 = vst.msk [vmem:[#allocation0] sm:$0x1] %vm21_vm3, %v20_v9  }
  0x7b   :  { %28 = vst.msk [vmem:[#allocation0] sm:$0x1] %vm27_vm4, %v26_v11  }
  0x7c   :  { %v32_v12 = vpop.permute.xlu0 %31   ;;  %v38_v13 = vpop.permute.xlu1 %37  }
  0x7d   :  { %34 = vst.msk [vmem:[#allocation0] sm:$0x1] %vm33_vm5, %v32_v12  }
  0x7e   :  { %40 = vst.msk [vmem:[#allocation0] sm:$0x1] %vm39_vm6, %v38_v13  }
  0x80   :  { %v44_v14 = vpop.permute.xlu0 %43  }
  0x81   :  { %46 = vst.msk [vmem:[#allocation0] sm:$0x1] %vm45_vm7, %v44_v14  }
  0x88   :  { %v50_v15 = vld [vmem:[#allocation0] sm:$0x1] }
  0x89   :  { %52 = vst [vmem:[%s112_s1] sm:$0x1] %v50_v15 }

// kernel: _patch_encoder_jit.1
= control target key start
LH: loop header
LB: loop body
LE: loop exit
PB: predicated region body
PF: predicated region fallthrough
CT: control target
= control target key end

     0   :  { %v125_v0 = vmov 0.0|0.0   ;;  %vm126_vm0 = vmmov 0   ;;  %v127_v3 = vmov 0.0   ;;  %vm25_vm1 = vcmask 195584   ;;  %s166_s1 = inlined_call_operand.vmem [shape: f32[24,128], index: 1, kind: input, shape index: {}]   ;;  %s167_s0 = inlined_call_operand.vmem [shape: f32[8,24], index: 0, kind: input, shape index: {}]   ;;  %s168_s2 = inlined_call_operand.vmem [shape: f32[1,128], index: 2, kind: input, shape index: {}]   ;;  %s169_s3 = inlined_call_operand.vmem [shape: f32[8,128], index: 3, kind: output, shape index: {}]  }
   0x1   :  { %119 = vmatprep.subr.bf16.mxu0 %v125_v0  ;;  %v15_v1 = vld [vmem:[%s166_s1] sm:$0xff]  ;;  %v16_v2 = vld [vmem:[%s166_s1 + $0x8] sm:$0xff]  ;;  %116 = vmatprep.mubr.msk.f32.mxu0 %vm126_vm0, %v127_v3  ;;  %v17_v5 = vld [vmem:[%s166_s1 + $0x10] sm:$0xff] }
   0x2   :  { %v120_v4 = vpack.c.bf16 %v16_v2, %v15_v1  ;;  %v14_v6 = vld [vmem:[%s167_s0] sm:$0xff] }
   0x3   :  { %v104_v7 = vld [vmem:[%s168_s2] ss:$0 sm:$0xff] }
   0x4   :  { %121 = vmatpush3.bf16.msra.mxu0 %v120_v4 }
   0x5   :  { %114 = vmatprep.subr.mxu0 %v127_v3 }
   0x8   :  { %115 = vmatpush3.msra.mxu0 %v17_v5 }
   0x9   :  { %117 = vmatmul.mubr.msk.f32.vlgmr.msra.gmra.mrb[0].mxu0 %vm25_vm1, %v14_v6 }
  0xdc   :  { %v95_v8 = vpop.f32.mrb[0].mxu0 }
  0xdd   :  { %v96_v9 = vadd.f32 %v104_v7, %v95_v8  ;;  %v118_v10 = vpop.f32.mrb[1].mxu0 }
  0xdf   :  { %99 = vst [vmem:[%s169_s3] sm:$0xff] %v96_v9 }

</bundles_post_ra>
